<compile_context>
chip_gen: v5e
topology: v5e:2x2
jax: 0.10.0
libtpu: 0.0.40
codegen_flags: <defaults>
</compile_context>

<pallas_src>
import functools

import numpy as np
import jax
import jax.numpy as jnp
from jax.experimental import pallas as pl
from jax.experimental.pallas import tpu as pltpu


def bbox_pe_kernel(bbox_ref, freq_ref, w1s_ref, w1c_ref, b1_ref, w2_ref, b2_ref,
                   o_ref, *, use_bf16=False):
    """sin/cos encoding + Linear -> ReLU -> Linear for one lane-packed row tile."""
    bbox = bbox_ref[...]                         # (T, 4*G)  f32
    freq = freq_ref[...]                         # (4*G, L)  block-diag freqs (L = G*d_model)

    # Angle slab in one small matmul: ang[:, g*dm + c*q + k] = bbox[:, g*4+c] * inv[k]
    ang = jnp.dot(bbox, freq, preferred_element_type=jnp.float32)   # (T, L)

    s = jnp.sin(ang)                             # one lane-dense EUP pass
    c = jnp.cos(ang)                             # one lane-dense EUP pass

    w1s = w1s_ref[...]                           # (L, L) block-diag of W1_sin
    w1c = w1c_ref[...]                           # (L, L) block-diag of W1_cos
    if use_bf16:                                 # only the Linear matmuls go bf16
        s = s.astype(jnp.bfloat16)
        c = c.astype(jnp.bfloat16)
        w1s = w1s.astype(jnp.bfloat16)
        w1c = w1c.astype(jnp.bfloat16)

    h = (jnp.dot(s, w1s, preferred_element_type=jnp.float32)
         + jnp.dot(c, w1c, preferred_element_type=jnp.float32)
         + b1_ref[...])
    h = jnp.maximum(h, 0.0)                      # ReLU

    w2 = w2_ref[...]                             # (L, L) block-diag of W2
    if use_bf16:
        h = h.astype(jnp.bfloat16)
        w2 = w2.astype(jnp.bfloat16)
    o_ref[...] = jnp.dot(h, w2, preferred_element_type=jnp.float32) + b2_ref[...]


def _round_up(a, m):
    return ((a + m - 1) // m) * m


def bbox_positional_encoding(bbox, params, d_model, temp=10000.0, tile_n=4096,
                             use_bf16_matmul=False):
    """Flattens batch dims, lane-packs rows, builds block-diagonal weights, runs pallas_call."""
    *lead, four = bbox.shape
    assert four == 4
    assert d_model % 4 == 0
    n = int(np.prod(lead)) if lead else 1

    dim_per_coord = d_model // 2
    q = dim_per_coord // 2                       # (sin, cos) frequency pairs per coord

    # ---- lane packing factor -------------------------------------------------
    G = max(1, 128 // d_model)                   # rows per 128-lane slab (4 for d_model=32)
    lane_w = G * d_model                         # packed feature width (128 here)

    # ---- frequency matrix ----------------------------------------------------
    # Small block-diag: freq_small[c, c*q + k] = 1 / temp^(2k / dim_per_coord)
    kk = np.arange(q, dtype=np.float32)
    inv = (1.0 / (temp ** (2.0 * kk / dim_per_coord))).astype(np.float32)
    freq_small = np.zeros((4, d_model), dtype=np.float32)
    for cidx in range(4):
        freq_small[cidx, cidx * q:(cidx + 1) * q] = inv
    freq = jnp.asarray(np.kron(np.eye(G, dtype=np.float32), freq_small))  # (4G, lane_w)

    # ---- weights: permute torch interleaved sin/cos order, then block-diag ----
    # Kernel feature order per group: [sin(c0 f0..fq-1), ..., sin(c3 ...), cos(c0 ...), ...]
    # Torch order per coord:          [sin f0, cos f0, sin f1, cos f1, ...]
    perm = ([c * dim_per_coord + 2 * k for c in range(4) for k in range(q)]        # sin rows
            + [c * dim_per_coord + 2 * k + 1 for c in range(4) for k in range(q)])  # cos rows
    w1p = params["w1"].T[np.asarray(perm, dtype=np.int32), :]     # (2*d_model, d_model)
    eye_g = jnp.eye(G, dtype=jnp.float32)
    w1s = jnp.kron(eye_g, w1p[:d_model, :])                       # (lane_w, lane_w)
    w1c = jnp.kron(eye_g, w1p[d_model:, :])                       # (lane_w, lane_w)
    w2 = jnp.kron(eye_g, params["w2"].T)                          # (lane_w, lane_w)
    b1 = jnp.tile(params["b1"].reshape(1, d_model), (1, G))       # (1, lane_w)
    b2 = jnp.tile(params["b2"].reshape(1, d_model), (1, G))       # (1, lane_w)

    # ---- pack rows + pick one large tile --------------------------------------
    bbox2 = bbox.reshape(n, 4).astype(jnp.float32)
    n_row_pad = _round_up(n, G)
    if n_row_pad != n:
        bbox2 = jnp.pad(bbox2, ((0, n_row_pad - n), (0, 0)))
    n_pack = n_row_pad // G
    bboxp = bbox2.reshape(n_pack, 4 * G)                          # (n_pack, 4G)

    # Biggest tile up to tile_n original rows; no artificial grid splitting
    # (v5e/v6e are single-TC; v7x still gets a multi-step "parallel" grid for large N).
    tile_p = min(_round_up(max(tile_n // G, 8), 8), _round_up(n_pack, 8))
    n_pack_pad = _round_up(n_pack, tile_p)
    if n_pack_pad != n_pack:
        bboxp = jnp.pad(bboxp, ((0, n_pack_pad - n_pack), (0, 0)))
    grid = (n_pack_pad // tile_p,)

    # ---- advisory cost estimate ------------------------------------------------
    flops_per_prow = 2 * (4 * G) * lane_w + 3 * (2 * lane_w * lane_w)
    cost = pl.CostEstimate(
        flops=int(n_pack_pad * flops_per_prow),
        transcendentals=int(2 * n_pack_pad * lane_w),
        bytes_accessed=int(bboxp.size * 4 + n_pack_pad * lane_w * 4
                           + (freq.size + w1s.size + w1c.size + w2.size
                              + b1.size + b2.size) * 4),
    )

    out = pl.pallas_call(
        functools.partial(bbox_pe_kernel, use_bf16=use_bf16_matmul),
        out_shape=jax.ShapeDtypeStruct((n_pack_pad, lane_w), jnp.float32),
        grid=grid,
        in_specs=[
            pl.BlockSpec((tile_p, 4 * G), lambda i: (i, 0)),
            pl.BlockSpec((4 * G, lane_w), lambda i: (0, 0)),
            pl.BlockSpec((lane_w, lane_w), lambda i: (0, 0)),
            pl.BlockSpec((lane_w, lane_w), lambda i: (0, 0)),
            pl.BlockSpec((1, lane_w), lambda i: (0, 0)),
            pl.BlockSpec((lane_w, lane_w), lambda i: (0, 0)),
            pl.BlockSpec((1, lane_w), lambda i: (0, 0)),
        ],
        out_specs=pl.BlockSpec((tile_p, lane_w), lambda i: (i, 0)),
        compiler_params=pltpu.CompilerParams(dimension_semantics=("parallel",)),
        cost_estimate=cost,
    )(bboxp, freq, w1s, w1c, b1, w2, b2)

    # Unpack lanes back to rows; padded rows produce garbage (cos(0)=1 feeds biases),
    # so the [:n] slice is required for correctness.
    out = out.reshape(n_pack_pad * G, d_model)[:n]
    return out.reshape(*lead, d_model)


def reference(bbox, params, d_model, temp=10000.0):
    """Pure-JAX replica of the PyTorch forward (interleaved sin/cos)."""
    dim = d_model // 2
    dim_t = temp ** (jnp.arange(0, dim, 2, dtype=jnp.float32) / dim)

    def pe(x):                                   # x: (..., 1)
        pos = x[..., None]                       # (..., 1, 1)
        enc = jnp.zeros(pos.shape[:-1] + (dim,), dtype=jnp.float32)
        enc = enc.at[..., 0::2].set(jnp.sin(pos / dim_t))
        enc = enc.at[..., 1::2].set(jnp.cos(pos / dim_t))
        return jnp.squeeze(enc, -2)

    parts = [pe(bbox[..., k:k + 1]) for k in range(4)]
    concat = jnp.concatenate(parts, axis=-1)     # (..., 2*d_model)
    h = concat @ params["w1"].T + params["b1"]
    h = jnp.maximum(h, 0.0)
    return h @ params["w2"].T + params["b2"]


if __name__ == "__main__":
    d_model = 32
    batch, seq = 2, 8                            # N = 16 bboxes
    temp = 10000.0

    key = jax.random.PRNGKey(0)
    k_bbox, k_w1, k_b1, k_w2, k_b2 = jax.random.split(key, 5)

    bbox = jax.random.uniform(k_bbox, (batch, seq, 4), dtype=jnp.float32)

    # Deterministic synthetic parameters (shapes match nn.Linear in __init__).
    params = {
        "w1": jax.random.normal(k_w1, (d_model, 2 * d_model), jnp.float32) * 0.05,
        "b1": jax.random.normal(k_b1, (d_model,), jnp.float32) * 0.01,
        "w2": jax.random.normal(k_w2, (d_model, d_model), jnp.float32) * 0.05,
        "b2": jax.random.normal(k_b2, (d_model,), jnp.float32) * 0.01,
    }

    out = bbox_positional_encoding(bbox, params, d_model, temp)
    out = jax.block_until_ready(out)

    ref = reference(bbox, params, d_model, temp)
    assert out.shape == (batch, seq, d_model)
    assert jnp.allclose(out, ref, atol=1e-4, rtol=1e-4), "mismatch vs pure-JAX reference"

    print("KERNEL_OK")
</pallas_src>

<mosaic_0001>
module attributes {stable_mosaic.version = 11 : i64} {
  func.func @bbox_pe_kernel(%arg0: i32, %arg1: memref<8x16xf32, #tpu.memory_space<vmem>>, %arg2: memref<16x128xf32, #tpu.memory_space<vmem>>, %arg3: memref<128x128xf32, #tpu.memory_space<vmem>>, %arg4: memref<128x128xf32, #tpu.memory_space<vmem>>, %arg5: memref<1x128xf32, #tpu.memory_space<vmem>>, %arg6: memref<128x128xf32, #tpu.memory_space<vmem>>, %arg7: memref<1x128xf32, #tpu.memory_space<vmem>>, %arg8: memref<8x128xf32, #tpu.memory_space<vmem>>) attributes {dimension_semantics = [#tpu.dimension_semantics<parallel>], iteration_bounds = array<i64: 1>, scalar_prefetch = 0 : i64, scratch_operands = 0 : i64, tpu.core_type = #tpu.core_type<tc>, window_params = [{transform_indices = @transform_0, window_bounds = array<i64: 8, 16>}, {pipeline_mode = #tpu.pipeline_mode<synchronous>, transform_indices = @transform_1, window_bounds = array<i64: 16, 128>}, {pipeline_mode = #tpu.pipeline_mode<synchronous>, transform_indices = @transform_2, window_bounds = array<i64: 128, 128>}, {pipeline_mode = #tpu.pipeline_mode<synchronous>, transform_indices = @transform_3, window_bounds = array<i64: 128, 128>}, {pipeline_mode = #tpu.pipeline_mode<synchronous>, transform_indices = @transform_4, window_bounds = array<i64: 1, 128>}, {pipeline_mode = #tpu.pipeline_mode<synchronous>, transform_indices = @transform_5, window_bounds = array<i64: 128, 128>}, {pipeline_mode = #tpu.pipeline_mode<synchronous>, transform_indices = @transform_6, window_bounds = array<i64: 1, 128>}, {transform_indices = @transform_7, window_bounds = array<i64: 8, 128>}]} {
    %c0 = arith.constant 0 : index
    %c0_0 = arith.constant 0 : index
    %0 = vector.load %arg1[%c0, %c0_0] : memref<8x16xf32, #tpu.memory_space<vmem>>, vector<8x16xf32>
    %c0_1 = arith.constant 0 : index
    %c0_2 = arith.constant 0 : index
    %1 = vector.load %arg2[%c0_1, %c0_2] : memref<16x128xf32, #tpu.memory_space<vmem>>, vector<16x128xf32>
    %cst = arith.constant dense<0.000000e+00> : vector<8x128xf32>
    %2 = tpu.matmul %0, %1, %cst {dimension_numbers = #tpu.dot_dimension_numbers<[1], [0], [0], [1], [0, 0, 1, 1], [], []>} : vector<8x16xf32>, vector<16x128xf32>, vector<8x128xf32> -> vector<8x128xf32>
    %3 = math.sin %2 : vector<8x128xf32>
    %4 = math.cos %2 : vector<8x128xf32>
    %c0_3 = arith.constant 0 : index
    %c0_4 = arith.constant 0 : index
    %5 = vector.load %arg3[%c0_3, %c0_4] : memref<128x128xf32, #tpu.memory_space<vmem>>, vector<128x128xf32>
    %c0_5 = arith.constant 0 : index
    %c0_6 = arith.constant 0 : index
    %6 = vector.load %arg4[%c0_5, %c0_6] : memref<128x128xf32, #tpu.memory_space<vmem>>, vector<128x128xf32>
    %cst_7 = arith.constant dense<0.000000e+00> : vector<8x128xf32>
    %7 = tpu.matmul %3, %5, %cst_7 {dimension_numbers = #tpu.dot_dimension_numbers<[1], [0], [0], [1], [0, 0, 1, 1], [], []>} : vector<8x128xf32>, vector<128x128xf32>, vector<8x128xf32> -> vector<8x128xf32>
    %cst_8 = arith.constant dense<0.000000e+00> : vector<8x128xf32>
    %8 = tpu.matmul %4, %6, %cst_8 {dimension_numbers = #tpu.dot_dimension_numbers<[1], [0], [0], [1], [0, 0, 1, 1], [], []>} : vector<8x128xf32>, vector<128x128xf32>, vector<8x128xf32> -> vector<8x128xf32>
    %9 = arith.addf %7, %8 : vector<8x128xf32>
    %c0_9 = arith.constant 0 : index
    %c0_10 = arith.constant 0 : index
    %10 = vector.load %arg5[%c0_9, %c0_10] : memref<1x128xf32, #tpu.memory_space<vmem>>, vector<1x128xf32>
    %11 = vector.broadcast %10 : vector<1x128xf32> to vector<8x128xf32>
    %12 = arith.addf %9, %11 : vector<8x128xf32>
    %cst_11 = arith.constant 0.000000e+00 : f32
    %13 = vector.broadcast %cst_11 : f32 to vector<8x128xf32>
    %14 = arith.maximumf %12, %13 : vector<8x128xf32>
    %c0_12 = arith.constant 0 : index
    %c0_13 = arith.constant 0 : index
    %15 = vector.load %arg6[%c0_12, %c0_13] : memref<128x128xf32, #tpu.memory_space<vmem>>, vector<128x128xf32>
    %cst_14 = arith.constant dense<0.000000e+00> : vector<8x128xf32>
    %16 = tpu.matmul %14, %15, %cst_14 {dimension_numbers = #tpu.dot_dimension_numbers<[1], [0], [0], [1], [0, 0, 1, 1], [], []>} : vector<8x128xf32>, vector<128x128xf32>, vector<8x128xf32> -> vector<8x128xf32>
    %c0_15 = arith.constant 0 : index
    %c0_16 = arith.constant 0 : index
    %17 = vector.load %arg7[%c0_15, %c0_16] : memref<1x128xf32, #tpu.memory_space<vmem>>, vector<1x128xf32>
    %18 = vector.broadcast %17 : vector<1x128xf32> to vector<8x128xf32>
    %19 = arith.addf %16, %18 : vector<8x128xf32>
    %c0_17 = arith.constant 0 : index
    %c0_18 = arith.constant 0 : index
    %20 = vector.load %arg8[%c0_17, %c0_18] : memref<8x128xf32, #tpu.memory_space<vmem>>, vector<8x128xf32>
    tpu.vector_store %arg8[%c0_17, %c0_18], %19 {strides = array<i32>} : memref<8x128xf32, #tpu.memory_space<vmem>>, vector<8x128xf32>,
    return
  }
  func.func @transform_0(%arg0: i32) -> (i32, i32) {
    %c0_i32 = arith.constant 0 : i32
    %c0_i32_0 = arith.constant 0 : i32
    return %arg0, %c0_i32 : i32, i32
  }
  func.func @transform_1(%arg0: i32) -> (i32, i32) {
    %c0_i32 = arith.constant 0 : i32
    %c0_i32_0 = arith.constant 0 : i32
    %c0_i32_1 = arith.constant 0 : i32
    return %c0_i32, %c0_i32_0 : i32, i32
  }
  func.func @transform_2(%arg0: i32) -> (i32, i32) {
    %c0_i32 = arith.constant 0 : i32
    %c0_i32_0 = arith.constant 0 : i32
    %c0_i32_1 = arith.constant 0 : i32
    return %c0_i32, %c0_i32_0 : i32, i32
  }
  func.func @transform_3(%arg0: i32) -> (i32, i32) {
    %c0_i32 = arith.constant 0 : i32
    %c0_i32_0 = arith.constant 0 : i32
    %c0_i32_1 = arith.constant 0 : i32
    return %c0_i32, %c0_i32_0 : i32, i32
  }
  func.func @transform_4(%arg0: i32) -> (i32, i32) {
    %c0_i32 = arith.constant 0 : i32
    %c0_i32_0 = arith.constant 0 : i32
    %c0_i32_1 = arith.constant 0 : i32
    return %c0_i32, %c0_i32_0 : i32, i32
  }
  func.func @transform_5(%arg0: i32) -> (i32, i32) {
    %c0_i32 = arith.constant 0 : i32
    %c0_i32_0 = arith.constant 0 : i32
    %c0_i32_1 = arith.constant 0 : i32
    return %c0_i32, %c0_i32_0 : i32, i32
  }
  func.func @transform_6(%arg0: i32) -> (i32, i32) {
    %c0_i32 = arith.constant 0 : i32
    %c0_i32_0 = arith.constant 0 : i32
    %c0_i32_1 = arith.constant 0 : i32
    return %c0_i32, %c0_i32_0 : i32, i32
  }
  func.func @transform_7(%arg0: i32) -> (i32, i32) {
    %c0_i32 = arith.constant 0 : i32
    %c0_i32_0 = arith.constant 0 : i32
    return %arg0, %c0_i32 : i32, i32
  }
}

</mosaic_0001>

<bundles_post_ra>
// kernel: tpu_custom_call.1
= control target key start
LH: loop header
LB: loop body
LE: loop exit
PB: predicated region body
PF: predicated region fallthrough
CT: control target
= control target key end

     0   :  { %12 = vsyncpa [#allocation3], 0  ;;  %s909_s0 = inlined_call_operand.hbm [shape: f32[8,16], index: 0, kind: input, shape index: {}]   ;;  %s910_s1 = inlined_call_operand.hbm [shape: f32[16,128], index: 1, kind: input, shape index: {}]   ;;  %s911_s2 = inlined_call_operand.hbm [shape: f32[128,128], index: 2, kind: input, shape index: {}]   ;;  %s912_s3 = inlined_call_operand.hbm [shape: f32[128,128], index: 3, kind: input, shape index: {}]   ;;  %s913_s4 = inlined_call_operand.vmem [shape: f32[1,128], index: 4, kind: input, shape index: {}]   ;;  %s914_s5 = inlined_call_operand.hbm [shape: f32[128,128], index: 5, kind: input, shape index: {}]   ;;  %s915_s6 = inlined_call_operand.vmem [shape: f32[1,128], index: 6, kind: input, shape index: {}]   ;;  %s916_s7 = inlined_call_operand.hbm [shape: f32[8,128], index: 7, kind: output, shape index: {}]  }
   0x1   :  { %13 = vsyncpa [#allocation6], 0 }
   0x2   :  { %14 = vsyncpa [#allocation9], 0  ;;  %s31_s26 = sshll.u32 %s910_s1, 4  ;;  %s32_s26 = int_to_ptr.hbm [resolvable:$true] %s31_s26 }
   0x3   :  { %15 = vsyncpa [#allocation4], 0  ;;  %s753_s27 = smov [#allocation5]   ;;  %s57_s8 = sshll.u32 %s912_s3, 4  ;;  %s58_s8 = int_to_ptr.hbm [resolvable:$true] %s57_s8 }
   0x4   :  { %s33_s28 = sshll.u32 %s753_s27, 4  ;;  %s754_s9 = smov 128   ;;  %s34_s28 = int_to_ptr.vmem [resolvable:$true] %s33_s28 }
   0x5   :  { %s755_s10 = smov 8   ;;  %s756_s11 = smov [#allocation8]  }
   0x6   :  { %39 = dma.hbm_to_vmem [thread:$0]  %s32_s26, 256, %s34_s28, [#allocation6], %s754_s9, %s754_s9, %s755_s10  }
   0x7   :  { %s59_s12 = sshll.u32 %s756_s11, 4  ;;  %s21_s15 = sshll.u32 %s909_s0, 4  ;;  %s60_s12 = int_to_ptr.vmem [resolvable:$true] %s59_s12  ;;  %s22_s15 = int_to_ptr.hbm [resolvable:$true] %s21_s15 }
   0x8   :  { %65 = dma.hbm_to_vmem [thread:$0]  %s58_s8, 2048, %s60_s12, [#allocation9], %s754_s9, %s754_s9, %s755_s10  }
   0x9   :  { %s44_s17 = sshll.u32 %s911_s2, 4  ;;  %s757_s18 = smov [#allocation2]   ;;  %s45_s17 = int_to_ptr.hbm [resolvable:$true] %s44_s17 }
   0xa   :  { %s23_s19 = sshll.u32 %s757_s18, 4  ;;  %s758_s3 = smov [#allocation7]   ;;  %s24_s19 = int_to_ptr.vmem [resolvable:$true] %s23_s19 }
   0xb   :  { %26 = dma.hbm_to_vmem [thread:$0]  %s22_s15, 128, %s24_s19, [#allocation3]  }
   0xc   :  { %s46_s20 = sshll.u32 %s758_s3, 4  ;;  %s72_s23 = sshll.u32 %s914_s5, 4  ;;  %s47_s20 = int_to_ptr.vmem [resolvable:$true] %s46_s20  ;;  %s73_s23 = int_to_ptr.hbm [resolvable:$true] %s72_s23 }
   0xd   :  { %52 = dma.hbm_to_vmem [thread:$0]  %s45_s17, 2048, %s47_s20, [#allocation6], %s754_s9, %s754_s9, %s755_s10  }
   0xe   :  { %s759_s0 = smov [#allocation10]  }
   0xf   :  { %s74_s24 = sshll.u32 %s759_s0, 4  ;;  %s75_s24 = int_to_ptr.vmem [resolvable:$true] %s74_s24 }
  0x10   :  { %80 = dma.hbm_to_vmem [thread:$0]  %s73_s23, 2048, %s75_s24, [#allocation9], %s754_s9, %s754_s9, %s755_s10  }
  0x11   :  { %745 = dma.done.wait [#allocation3], 128  }
  0x12   :  { %746 = vsyncadd [#allocation3], 4294967168 }
  0x13   :  { %747 = dma.done.wait [#allocation6], 2304  }
  0x14   :  { %748 = vsyncadd [#allocation6], 4294964992 }
  0x15   :  { %749 = dma.done.wait [#allocation9], 4096  }
  0x16   :  { %750 = vsyncadd [#allocation9], 4294963200  ;;  %v105_v0 = vld [vmem:[#allocation5 + $0x8] sm:$0xff]  ;;  %v104_v1 = vld [vmem:[#allocation5] sm:$0xff]  ;;  %vm106_vm0 = vcmask 130048   ;;  %v766_v63 = vmov 0  }
  0x17   :  { %124 = vmatpush.msra.mxu0 %v105_v0  ;;  %v103_v2 = vld [vmem:[#allocation2] sm:$0xff]  ;;  %v760_v15 = vmov 683565275   ;;  %v761_v17 = vmov 2475754826   ;;  %s767_s27 = smov [#allocation11]  }
  0x18   :  { %v762_v20 = vmov 2131351028   ;;  %v763_v23 = vmov 2102212464   ;;  %v764_v26 = vmov 920167782  }
  0x19   :  { %125 = vmatpush.msra.mxu0 %v104_v1  ;;  %v765_v29 = vmov 1326507024   ;;  %s563_s28 = sshll.u32 %s767_s27, 4  ;;  %s565_s8 = sshll.u32 %s916_s7, 4  ;;  %s564_s28 = int_to_ptr.vmem [resolvable:$true] %s563_s28  ;;  %s566_s8 = int_to_ptr.hbm [resolvable:$true] %s565_s8 }
  0x1a   :  { %577 = vmatmul.msk.f32.vlgmr.msra.gmra.mxu0 %vm106_vm0, %v103_v2 }
  0x97   :  { %v823_v3 = vpop.f32.mrf.mxu0 }
  0x98   :  { %v133_v4 = vand.u32 2139095040, %v823_v3  ;;  %v130_v7 = vand.u32 2147483647, %v823_v3  ;;  %vm132_vm13 = vcmp.lt.s32.totalorder %v823_v3, 0 }
  0x9a   :  { %v134_v5 = vshrl.u32 %v133_v4, 23  ;;  %v137_v9 = vand.u32 8388607, %v130_v7  ;;  %vm888_vm14 = vcmp.le.f32.partialorder %v130_v7, 0.7853982 }
  0x9c   :  { %v578_v6 = vadd.s32 4294967169, %v134_v5  ;;  %v138_v13 = vor.u32 8388608, %v137_v9 }
  0x9e   :  { %v140_v8 = vadd.s32 1, %v578_v6  ;;  %v840_v36 = vshll.u32 %v138_v13, 8 }
  0xa0   :  { %vm141_vm1 = vcmp.gt.s32.totalorder %v140_v8, 0  ;;  %v179_v45 = vand.u32 65535, %v840_v36  ;;  %v180_v46 = vshrl.u32 %v840_v36, 16 }
  0xa1   :  { %v142_v10 = vsel %vm141_vm1, %v140_v8, 0 }
  0xa2   :  { %v144_v11 = vand.u32 31, %v142_v10  ;;  %v831_v14 = vshrl.u32 %v142_v10, 5 }
  0xa4   :  { %v829_v12 = vsub.s32 32, %v144_v11  ;;  %v147_v16 = vshll.u32 %v760_v15, %v144_v11  ;;  %v150_v18 = vshll.u32 %v761_v17, %v144_v11  ;;  %v153_v22 = vshll.u32 %v762_v20, %v144_v11 }
  0xa5   :  { %v156_v25 = vshll.u32 %v763_v23, %v144_v11  ;;  %v159_v28 = vshll.u32 %v764_v26, %v144_v11  ;;  %vm162_vm2 = vcmp.lt.s32.totalorder %v831_v14, 1  ;;  %vm165_vm3 = vcmp.lt.s32.totalorder %v831_v14, 4 }
  0xa6   :  { %v148_v19 = vshrl.u32 %v761_v17, %v829_v12  ;;  %v151_v21 = vshrl.u32 %v762_v20, %v829_v12  ;;  %v154_v24 = vshrl.u32 %v763_v23, %v829_v12  ;;  %v157_v27 = vshrl.u32 %v764_v26, %v829_v12  ;;  %v454_v26 = vld [vmem:[#allocation7 + $0x78] sm:$0xff] }
  0xa7   :  { %v160_v30 = vshrl.u32 %v765_v29, %v829_v12  ;;  %vm164_vm4 = vcmp.lt.s32.totalorder %v831_v14, 3  ;;  %vm163_vm5 = vcmp.lt.s32.totalorder %v831_v14, 2  ;;  %v146_v10 = vshrl.u32 %v760_v15, %v829_v12  ;;  %491 = vmatpush.msra.mxu2 %v454_v26  ;;  %v469_v29 = vld [vmem:[#allocation8 + $0x70] sm:$0xff]  ;;  %v529_v26 = vld [vmem:[#allocation10 + $0x60] sm:$0xff] }
  0xa8   :  { %v149_v31 = vor.u32 %v148_v19, %v147_v16  ;;  %v152_v32 = vor.u32 %v151_v21, %v150_v18  ;;  %v155_v33 = vor.u32 %v154_v24, %v153_v22  ;;  %v158_v34 = vor.u32 %v157_v27, %v156_v25  ;;  %v470_v25 = vld [vmem:[#allocation8 + $0x78] sm:$0xff] }
  0xa9   :  { %v161_v35 = vor.u32 %v160_v30, %v159_v28  ;;  %471 = vmatpush.msra.mxu1 %v470_v25  ;;  %v453_v30 = vld [vmem:[#allocation7 + $0x70] sm:$0xff] }
  0xaa   :  { %v170_v37 = vsel %vm162_vm2, %v149_v31, %v152_v32  ;;  %v174_v38 = vsel %vm162_vm2, %v152_v32, %v155_v33  ;;  %v171_v39 = vsel %vm165_vm3, %v158_v34, 920167782  ;;  %v167_v6 = vsel %vm165_vm3, %v155_v33, 2102212464  ;;  %492 = vmatpush.msra.mxu2 %v453_v30 }
  0xab   :  { %v175_v40 = vsel %vm165_vm3, %v161_v35, 1326507024  ;;  %v172_v41 = vsel %vm164_vm4, %v155_v33, %v171_v39  ;;  %v166_v19 = vsel %vm162_vm2, %v146_v10, %v149_v31  ;;  %v168_v20 = vsel %vm164_vm4, %v152_v32, %v167_v6  ;;  %472 = vmatpush.msra.mxu1 %v469_v29  ;;  %v468_v32 = vld [vmem:[#allocation8 + $0x68] sm:$0xff]  ;;  %v466_v39 = vld [vmem:[#allocation8 + $0x58] sm:$0xff] }
  0xac   :  { %v176_v42 = vsel %vm164_vm4, %v158_v34, %v175_v40  ;;  %v173_v43 = vsel %vm163_vm5, %v170_v37, %v172_v41  ;;  %v169_v15 = vsel %vm163_vm5, %v166_v19, %v168_v20  ;;  %v452_v33 = vld [vmem:[#allocation7 + $0x68] sm:$0xff]  ;;  %v467_v37 = vld [vmem:[#allocation8 + $0x60] sm:$0xff]  ;;  %v450_v40 = vld [vmem:[#allocation7 + $0x58] sm:$0xff] }
  0xad   :  { %v177_v44 = vsel %vm163_vm5, %v174_v38, %v176_v42  ;;  %v203_v49 = vand.u32 65535, %v173_v43  ;;  %v204_v50 = vshrl.u32 %v173_v43, 16  ;;  %v223_v34 = vmul.u32 %v840_v36, %v169_v15  ;;  %473 = vmatpush.msra.mxu1 %v468_v32  ;;  %493 = vmatpush.msra.mxu2 %v452_v33  ;;  %v451_v38 = vld [vmem:[#allocation7 + $0x60] sm:$0xff]  ;;  %v465_v42 = vld [vmem:[#allocation8 + $0x50] sm:$0xff]  ;;  %v464_v36 = vld [vmem:[#allocation8 + $0x48] sm:$0xff] }
  0xae   :  { %v181_v47 = vand.u32 65535, %v177_v44  ;;  %v182_v48 = vshrl.u32 %v177_v44, 16  ;;  %v449_v43 = vld [vmem:[#allocation7 + $0x50] sm:$0xff]  ;;  %v532_v20 = vld [vmem:[#allocation10 + $0x78] sm:$0xff]  ;;  %v526_v33 = vld [vmem:[#allocation10 + $0x48] sm:$0xff]  ;;  %vm273_vm5 = vweird.f32 %v823_v3 }
  0xaf   :  { %v206_v53 = vmul.u32 %v204_v50, %v179_v45  ;;  %v207_v54 = vmul.u32 %v203_v49, %v180_v46  ;;  %v205_v58 = vmul.u32 %v203_v49, %v179_v45  ;;  %v208_v62 = vmul.u32 %v204_v50, %v180_v46  ;;  %474 = vmatpush.msra.mxu1 %v467_v37  ;;  %v462_v50 = vld [vmem:[#allocation8 + $0x38] sm:$0xff] }
  0xb0   :  { %v184_v51 = vmul.u32 %v182_v48, %v179_v45  ;;  %v185_v52 = vmul.u32 %v181_v47, %v180_v46  ;;  %v183_v55 = vmul.u32 %v181_v47, %v179_v45  ;;  %v186_v57 = vmul.u32 %v182_v48, %v180_v46  ;;  %494 = vmatpush.msra.mxu2 %v451_v38  ;;  %v448_v45 = vld [vmem:[#allocation7 + $0x48] sm:$0xff]  ;;  %v463_v47 = vld [vmem:[#allocation8 + $0x40] sm:$0xff] }
  0xb1   :  { %v209_v59 = vshll.u32 %v206_v53, 16  ;;  %v211_v1 = vshll.u32 %v207_v54, 16  ;;  %v210_v17 = vshrl.u32 %v206_v53, 16  ;;  %v212_v23 = vshrl.u32 %v207_v54, 16  ;;  %475 = vmatpush.msra.mxu1 %v466_v39  ;;  %v447_v48 = vld [vmem:[#allocation7 + $0x40] sm:$0xff]  ;;  %v461_v53 = vld [vmem:[#allocation8 + $0x30] sm:$0xff]  ;;  %537 = vmatpush.msra.mxu3 %v532_v20 }
  0xb2   :  { %v187_v56 = vshll.u32 %v184_v51, 16  ;;  %v189_v60 = vshll.u32 %v185_v52, 16  ;;  %v188_v11 = vshrl.u32 %v184_v51, 16  ;;  %v190_v21 = vshrl.u32 %v185_v52, 16  ;;  %495 = vmatpush.msra.mxu2 %v450_v40  ;;  %v446_v51 = vld [vmem:[#allocation7 + $0x38] sm:$0xff]  ;;  %v445_v54 = vld [vmem:[#allocation7 + $0x30] sm:$0xff] }
  0xb3   :  { %vm213_vm7 = vc.u32 %v205_v58, %v209_v59  ;;  %v215_v2 = vadd.s32 %v209_v59, %v205_v58  ;;  %476 = vmatpush.msra.mxu1 %v465_v42  ;;  %v444_v58 = vld [vmem:[#allocation7 + $0x28] sm:$0xff] }
  0xb4   :  { %vm191_vm6 = vc.u32 %v183_v55, %v187_v56  ;;  %v193_v61 = vadd.s32 %v187_v56, %v183_v55  ;;  %v214_v5 = vsel %vm213_vm7, 1, %v766_v63  ;;  %496 = vmatpush.msra.mxu2 %v449_v43 }
  0xb5   :  { %v192_v0 = vsel %vm191_vm6, 1, %v766_v63  ;;  %v216_v9 = vadd.s32 %v214_v5, %v208_v62  ;;  %vm217_vm9 = vc.u32 %v215_v2, %v211_v1  ;;  %v873_v12 = vadd.s32 %v215_v2, %v211_v1  ;;  %477 = vmatpush.msra.mxu1 %v464_v36  ;;  %v458_v62 = vld [vmem:[#allocation8 + $0x18] sm:$0xff]  ;;  %v441_v2 = vld [vmem:[#allocation7 + $0x10] sm:$0xff] }
  0xb6   :  { %v194_v4 = vadd.s32 %v192_v0, %v186_v57  ;;  %vm195_vm8 = vc.u32 %v193_v61, %v189_v60  ;;  %v218_v16 = vsel %vm217_vm9, 1, %v766_v63  ;;  %497 = vmatpush.msra.mxu2 %v448_v45  ;;  %v460_v57 = vld [vmem:[#allocation8 + $0x28] sm:$0xff]  ;;  %v459_v60 = vld [vmem:[#allocation8 + $0x20] sm:$0xff]  ;;  %v457_v0 = vld [vmem:[#allocation8 + $0x10] sm:$0xff] }
  0xb7   :  { %v196_v8 = vsel %vm195_vm8, 1, %v766_v63  ;;  %v220_v18 = vadd.s32 %v218_v16, %v216_v9  ;;  %478 = vmatpush.msra.mxu1 %v463_v47  ;;  %v443_v61 = vld [vmem:[#allocation7 + $0x20] sm:$0xff]  ;;  %v442_v63 = vld [vmem:[#allocation7 + $0x18] sm:$0xff]  ;;  %v440_v9 = vld [vmem:[#allocation7 + $0x8] sm:$0xff] }
  0xb8   :  { %v198_v13 = vadd.s32 %v196_v8, %v194_v4  ;;  %498 = vmatpush.msra.mxu2 %v447_v48  ;;  %v456_v8 = vld [vmem:[#allocation8 + $0x8] sm:$0xff]  ;;  %v455_v16 = vld [vmem:[#allocation8] sm:$0xff] }
  0xb9   :  { %v221_v24 = vadd.s32 %v220_v18, %v210_v17  ;;  %479 = vmatpush.msra.mxu1 %v462_v50  ;;  %v439_v17 = vld [vmem:[#allocation7] sm:$0xff] }
  0xba   :  { %v199_v22 = vadd.s32 %v198_v13, %v188_v11  ;;  %499 = vmatpush.msra.mxu2 %v446_v51 }
  0xbb   :  { %v222_v28 = vadd.s32 %v221_v24, %v212_v23  ;;  %480 = vmatpush.msra.mxu1 %v461_v53  ;;  %v530_v23 = vld [vmem:[#allocation10 + $0x68] sm:$0xff] }
  0xbc   :  { %v871_v27 = vadd.s32 %v199_v22, %v190_v21  ;;  %500 = vmatpush.msra.mxu2 %v445_v54  ;;  %v531_v21 = vld [vmem:[#allocation10 + $0x70] sm:$0xff] }
  0xbd   :  { %v226_v31 = vadd.s32 1, %v222_v28  ;;  %481 = vmatpush.msra.mxu1 %v460_v57  ;;  %538 = vmatpush.msra.mxu3 %v531_v21 }
  0xbe   :  { %vm225_vm10 = vc.u32 %v871_v27, %v873_v12  ;;  %501 = vmatpush.msra.mxu2 %v444_v58  ;;  %v224_v4 = vadd.s32 %v873_v12, %v871_v27  ;;  %v528_v12 = vld [vmem:[#allocation10 + $0x58] sm:$0xff] }
  0xbf   :  { %v227_v35 = vsel %vm225_vm10, %v226_v31, %v222_v28  ;;  %482 = vmatpush.msra.mxu1 %v459_v60  ;;  %539 = vmatpush.msra.mxu3 %v530_v23  ;;  %v527_v28 = vld [vmem:[#allocation10 + $0x50] sm:$0xff] }
  0xc0   :  { %v228_v14 = vadd.s32 %v227_v35, %v223_v34  ;;  %502 = vmatpush.msra.mxu2 %v443_v61  ;;  %v525_v35 = vld [vmem:[#allocation10 + $0x40] sm:$0xff] }
  0xc1   :  { %483 = vmatpush.msra.mxu1 %v458_v62  ;;  %540 = vmatpush.msra.mxu3 %v529_v26 }
  0xc2   :  { %v229_v41 = vadd.s32 536870912, %v228_v14  ;;  %503 = vmatpush.msra.mxu2 %v442_v63  ;;  %v523_v63 = vld [vmem:[#allocation10 + $0x30] sm:$0xff] }
  0xc3   :  { %484 = vmatpush.msra.mxu1 %v457_v0  ;;  %541 = vmatpush.msra.mxu3 %v528_v12  ;;  %v522_v0 = vld [vmem:[#allocation10 + $0x28] sm:$0xff] }
  0xc4   :  { %v880_v44 = vshrl.u32 %v229_v41, 30  ;;  %504 = vmatpush.msra.mxu2 %v441_v2  ;;  %v520_v2 = vld [vmem:[#allocation10 + $0x18] sm:$0xff] }
  0xc5   :  { %485 = vmatpush.msra.mxu1 %v456_v8  ;;  %542 = vmatpush.msra.mxu3 %v527_v28 }
  0xc6   :  { %v231_v46 = vshll.u32 %v880_v44, 30  ;;  %505 = vmatpush.msra.mxu2 %v440_v9  ;;  %v254_v31 = vsub.s32 4, %v880_v44 }
  0xc7   :  { %486 = vmatpush.msra.mxu1 %v455_v16  ;;  %543 = vmatpush.msra.mxu3 %v526_v33  ;;  %v600_v16 = vld [vmem:[%s915_s6] ss:$0 sm:$0xff] }
  0xc8   :  { %v232_v49 = vsub.s32 %v228_v14, %v231_v46  ;;  %506 = vmatpush.msra.mxu2 %v439_v17  ;;  %v255_v7 = vsel %vm132_vm13, %v254_v31, %v880_v44  ;;  %v524_v14 = vld [vmem:[#allocation10 + $0x38] sm:$0xff] }
  0xc9   :  { %544 = vmatpush.msra.mxu3 %v525_v35  ;;  %v257_v41 = vsel %vm888_vm14, 0, %v255_v7 }
  0xca   :  { %vm233_vm11 = vcmp.lt.s32.totalorder %v232_v49, 0  ;;  %v234_v52 = vsub.s32 0, %v232_v49  ;;  %v274_v46 = vadd.s32 3, %v257_v41  ;;  %v429_v51 = vand.u32 3, %v257_v41 }
  0xcb   :  { %545 = vmatpush.msra.mxu3 %v524_v14 }
  0xcc   :  { %v235_v55 = vsel %vm233_vm11, %v234_v52, %v232_v49  ;;  %v275_v52 = vand.u32 3, %v274_v46  ;;  %vm430_vm15 = vcmp.lt.s32.totalorder %v429_v51, 2  ;;  %vm431_vm0 = vcmp.eq.s32.totalorder %v429_v51, 0 }
  0xcd   :  { %v236_v56 = vclz %v235_v55  ;;  %vm434_vm1 = vcmp.eq.s32.totalorder %v429_v51, 2  ;;  %546 = vmatpush.msra.mxu3 %v523_v63 }
  0xce   :  { %vm276_vm2 = vcmp.lt.s32.totalorder %v275_v52, 2  ;;  %vm277_vm3 = vcmp.eq.s32.totalorder %v275_v52, 0  ;;  %vm280_vm4 = vcmp.eq.s32.totalorder %v275_v52, 2 }
  0xcf   :  { %v579_v59 = vadd.s32 4294967294, %v236_v56  ;;  %547 = vmatpush.msra.mxu3 %v522_v0 }
  0xd1   :  { %vm580_vm12 = vcmp.lt.s32.totalorder %v579_v59, 0 }
  0xd2   :  { %v239_v1 = vsel %vm580_vm12, 0, %v579_v59 }
  0xd3   :  { %v240_v5 = vsub.s32 32, %v239_v1  ;;  %v244_v6 = vsub.s32 4294967266, %v239_v1  ;;  %v241_v10 = vshll.u32 %v232_v49, %v239_v1  ;;  %v521_v1 = vld [vmem:[#allocation10 + $0x20] sm:$0xff] }
  0xd4   :  { %548 = vmatpush.msra.mxu3 %v521_v1 }
  0xd5   :  { %v242_v11 = vshrl.u32 %v224_v4, %v240_v5  ;;  %v245_v13 = vadd.s32 127, %v244_v6  ;;  %v519_v4 = vld [vmem:[#allocation10 + $0x10] sm:$0xff]  ;;  %v518_v5 = vld [vmem:[#allocation10 + $0x8] sm:$0xff]  ;;  %v517_v6 = vld [vmem:[#allocation10] sm:$0xff] }
  0xd6   :  { %549 = vmatpush.msra.mxu3 %v520_v2 }
  0xd7   :  { %v243_v18 = vor.u32 %v242_v11, %v241_v10  ;;  %v246_v19 = vshll.u32 %v245_v13, 23 }
  0xd8   :  { %550 = vmatpush.msra.mxu3 %v519_v4 }
  0xd9   :  { %v247_v22 = vor.u32 4788187, %v246_v19  ;;  %v250_v25 = vcvt.s32.f32 %v243_v18 }
  0xda   :  { %551 = vmatpush.msra.mxu3 %v518_v5 }
  0xdb   :  { %v248_v24 = vand.u32 2147483647, %v247_v22 }
  0xdc   :  { %552 = vmatpush.msra.mxu3 %v517_v6 }
  0xdd   :  { %v251_v27 = vmul.f32 %v250_v25, %v248_v24 }
  0xdf   :  { %v252_v15 = vxor.u32 2147483648, %v251_v27 }
  0xe1   :  { %v253_v30 = vsel %vm132_vm13, %v252_v15, %v251_v27 }
  0xe2   :  { %v256_v32 = vsel %vm888_vm14, %v823_v3, %v253_v30  ;;  %v599_v3 = vld [vmem:[%s913_s4] ss:$0 sm:$0xff] }
  0xe3   :  { %v258_v34 = vmul.f32 %v256_v32, %v256_v32 }
  0xe5   :  { %v266_v37 = vmul.f32 -0.00019511016, %v258_v34  ;;  %v259_v38 = vmul.f32 -0.001358992, %v258_v34 }
  0xe7   :  { %v267_v39 = vadd.f32 0.008332121, %v266_v37  ;;  %v260_v40 = vadd.f32 0.041655596, %v259_v38 }
  0xe9   :  { %v268_v42 = vmul.f32 %v267_v39, %v258_v34  ;;  %v261_v43 = vmul.f32 %v260_v40, %v258_v34 }
  0xeb   :  { %v269_v36 = vadd.f32 -0.16666654, %v268_v42  ;;  %v262_v45 = vadd.f32 -0.4999988, %v261_v43 }
  0xed   :  { %v270_v47 = vmul.f32 %v269_v36, %v258_v34  ;;  %v263_v48 = vmul.f32 %v262_v45, %v258_v34 }
  0xef   :  { %v271_v49 = vadd.f32 1.0, %v270_v47  ;;  %v264_v50 = vadd.f32 1.0, %v263_v48 }
  0xf1   :  { %v272_v44 = vmul.f32 %v271_v49, %v256_v32  ;;  %v281_v53 = vxor.u32 2147483648, %v264_v50 }
  0xf3   :  { %v278_v54 = vxor.u32 2147483648, %v272_v44  ;;  %v436_v56 = vsel %vm434_vm1, %v281_v53, %v272_v44  ;;  %v282_v58 = vsel %vm280_vm4, %v281_v53, %v272_v44 }
  0xf5   :  { %v433_v55 = vsel %vm431_vm0, %v264_v50, %v278_v54  ;;  %v279_v57 = vsel %vm277_vm3, %v264_v50, %v278_v54 }
  0xf6   :  { %v437_v59 = vsel %vm430_vm15, %v433_v55, %v436_v56  ;;  %v283_v60 = vsel %vm276_vm2, %v279_v57, %v282_v58 }
  0xf7   :  { %v438_v61 = vsel %vm273_vm5, nan, %v437_v59  ;;  %v284_v62 = vsel %vm273_vm5, nan, %v283_v60 }
  0xf8   :  { %487 = vmatmul.f32.vlgmr.msra.gmra.mxu1 %v438_v61  ;;  %507 = vmatmul.f32.vlgmr.msra.gmra.mxu2 %v284_v62 }
 0x175   :  { %v488_v8 = vpop.f32.mrf.mxu1 }
 0x17b   :  { %v508_v9 = vpop.f32.mrf.mxu2 }
 0x17c   :  { %v509_v10 = vadd.f32 %v508_v9, %v488_v8 }
 0x17e   :  { %v515_v11 = vadd.f32 %v599_v3, %v509_v10 }
 0x180   :  { %v516_v13 = vmax.f32 %v515_v11, 0.0 }
 0x182   :  { %553 = vmatmul.f32.vlgmr.msra.gmra.mxu3 %v516_v13 }
 0x205   :  { %v554_v17 = vpop.f32.mrf.mxu3 }
 0x206   :  { %v555_v18 = vadd.f32 %v600_v16, %v554_v17 }
 0x208   :  { %557 = vst [vmem:[#allocation11] sm:$0xff] %v555_v18 }
 0x209   :  { %568 = dma.vmem_to_hbm [thread:$0]  %s564_s28, 128, %s566_s8, [#allocation4]  }
 0x20a   :  { %751 = dma.done.wait [#allocation4], 128  }
 0x20b   :  { %752 = vsyncadd [#allocation4], 4294967168 }
 0x20c   :  { %573 = vsyncpa [#allocation3], 1 }
 0x20d   :  { %574 = vsyncpa [#allocation6], 1 }
 0x20e   :  { %575 = vsyncpa [#allocation9], 1 }
 0x20f   :  { %576 = vsyncpa [#allocation4], 1 }

</bundles_post_ra>
